<compile_context>
chip_gen: v5e
topology: v5e:2x2
jax: 0.10.0
libtpu: 0.0.40
codegen_flags: <defaults>
</compile_context>

<pallas_src>
import functools

import jax
import jax.numpy as jnp
from jax import lax
from jax.experimental import pallas as pl
from jax.experimental.pallas import tpu as pltpu


def _round_up(a, b):
    return ((a + b - 1) // b) * b


def _ece_kernel(logits_ref, labels_ref, out_ref,
                cnt_ref, csum_ref, asum_ref, *,
                inv_t, n_bins, n_valid, c_valid, n_padded):
    i = pl.program_id(0)
    tile_n, c_pad = logits_ref.shape

    @pl.when(i == 0)
    def _init():
        cnt_ref[...] = jnp.zeros_like(cnt_ref)
        csum_ref[...] = jnp.zeros_like(csum_ref)
        asum_ref[...] = jnp.zeros_like(asum_ref)

    x = logits_ref[...].astype(jnp.float32)         # (tile_n, c_pad)
    if inv_t != 1.0:
        x = x * jnp.float32(inv_t)

    col = lax.broadcasted_iota(jnp.int32, (tile_n, c_pad), 1)
    if c_valid < c_pad:
        # Padded class lanes never win the max and contribute exp(-inf)=0.
        x = jnp.where(col < c_valid, x, -jnp.inf)

    # Softmax statistics without materializing the probabilities:
    #   conf = max(softmax(x)) = exp(0) / sum(exp(x - m)) = 1 / s
    #   pred = first argmax of x (== argmax of softmax, torch.max tie rule)
    m = jnp.max(x, axis=-1, keepdims=True)           # (tile_n, 1)
    e = jnp.exp(x - m)
    s = jnp.sum(e, axis=-1, keepdims=True)           # (tile_n, 1)
    conf = 1.0 / s                                   # (tile_n, 1)

    is_max = x == m
    pred = jnp.min(jnp.where(is_max, col, c_pad), axis=-1, keepdims=True)
    correct = (pred == labels_ref[...]).astype(jnp.float32)   # (tile_n, 1)

    # Bin boundaries generated in-kernel (no extra VMEM inputs).
    bidx = lax.broadcasted_iota(jnp.int32, (1, n_bins), 1).astype(jnp.float32)
    lowers = bidx * jnp.float32(1.0 / n_bins)
    uppers = (bidx + 1.0) * jnp.float32(1.0 / n_bins)

    in_bin = jnp.logical_and(conf > lowers, conf <= uppers).astype(jnp.float32)

    if n_valid < n_padded:
        # Rows added by padding N contribute to no bin.
        row = lax.broadcasted_iota(jnp.int32, (tile_n, n_bins), 0) + i * tile_n
        in_bin = jnp.where(row < n_valid, in_bin, 0.0)

    cnt_ref[...] += jnp.sum(in_bin, axis=0, keepdims=True)
    csum_ref[...] += jnp.sum(conf * in_bin, axis=0, keepdims=True)
    asum_ref[...] += jnp.sum(correct * in_bin, axis=0, keepdims=True)

    @pl.when(i == pl.num_programs(0) - 1)
    def _finalize():
        counts = cnt_ref[...]
        nonzero = counts > 0.0
        inv_counts = 1.0 / jnp.where(nonzero, counts, 1.0)
        gap = jnp.abs((csum_ref[...] - asum_ref[...]) * inv_counts)
        prop = counts * jnp.float32(1.0 / n_valid)   # global N, not tile size
        ece = jnp.sum(jnp.where(nonzero, gap * prop, 0.0))
        out_ref[...] = jnp.reshape(ece, (1, 1))


def ece_loss(logits, labels, t=1.0, n_bins=15, block_rows=1024):
    """ECE of `logits` vs integer `labels`. Returns shape (1,) f32 like torch.zeros(1)."""
    logits = jnp.asarray(logits)
    if not jnp.issubdtype(logits.dtype, jnp.floating):
        logits = logits.astype(jnp.float32)          # keep bf16/f32 as-is
    labels = jnp.asarray(labels, jnp.int32).reshape(-1)

    n, c = logits.shape
    assert labels.shape[0] == n
    n_bins = int(n_bins)

    c_pad = _round_up(max(c, 128), 128)

    # Tile the sample axis; keep 2 x block_rows x c_pad x itemsize small enough
    # for every TPU generation's scoped VMEM (v7x: 64 MiB phys / 32 MiB scoped).
    itemsize = jnp.dtype(logits.dtype).itemsize
    max_rows = max(8, ((4 * 1024 * 1024) // (c_pad * itemsize)) // 8 * 8)
    block_rows = min(int(block_rows), max_rows, _round_up(n, 8))
    block_rows = max(8, (block_rows // 8) * 8)
    n_pad = _round_up(n, block_rows)
    num_tiles = n_pad // block_rows

    logits_p = jnp.pad(logits, ((0, n_pad - n), (0, c_pad - c)))
    labels_p = jnp.pad(labels, (0, n_pad - n)).reshape(n_pad, 1)

    kernel = functools.partial(
        _ece_kernel,
        inv_t=1.0 / float(t), n_bins=n_bins,
        n_valid=int(n), c_valid=int(c), n_padded=int(n_pad))

    out = pl.pallas_call(
        kernel,
        out_shape=jax.ShapeDtypeStruct((1, 1), jnp.float32),
        grid=(num_tiles,),
        in_specs=[
            pl.BlockSpec((block_rows, c_pad), lambda i: (i, 0)),   # logits tile
            pl.BlockSpec((block_rows, 1), lambda i: (i, 0)),       # labels tile
        ],
        out_specs=pl.BlockSpec((1, 1), lambda i: (0, 0)),
        scratch_shapes=[pltpu.VMEM((1, n_bins), jnp.float32) for _ in range(3)],
        compiler_params=pltpu.CompilerParams(
            dimension_semantics=("arbitrary",)),     # serial accumulation over N tiles
    )(logits_p, labels_p)
    return out.reshape(1)


def _ece_reference(logits, labels, t=1.0, n_bins=15):
    """Pure-JAX reference mirroring the PyTorch forward."""
    logits = jnp.asarray(logits, jnp.float32)
    probs = jax.nn.softmax(logits / t, axis=-1)
    conf = jnp.max(probs, axis=-1)
    pred = jnp.argmax(probs, axis=-1)
    acc = (pred == labels).astype(jnp.float32)
    boundaries = jnp.linspace(0.0, 1.0, n_bins + 1)
    ece = 0.0
    for b in range(n_bins):
        in_bin = (conf > boundaries[b]) & (conf <= boundaries[b + 1])
        cnt = jnp.sum(in_bin.astype(jnp.float32))
        prop = cnt / conf.shape[0]
        safe = jnp.where(cnt > 0, cnt, 1.0)
        gap = jnp.abs(jnp.sum(conf * in_bin) / safe - jnp.sum(acc * in_bin) / safe)
        ece = ece + jnp.where(cnt > 0, gap * prop, 0.0)
    return jnp.reshape(ece, (1,))


if __name__ == "__main__":
    key = jax.random.PRNGKey(0)
    k1, k2 = jax.random.split(key)
    N, C = 100, 10   # 100 samples, 10 classes
    logits = jax.random.normal(k1, (N, C), dtype=jnp.float32) * 3.0
    labels = jax.random.randint(k2, (N,), 0, C, dtype=jnp.int32)

    # Multi-tile path: grid of 4 tiles of 32 rows, exercises row + class padding
    # and the cross-tile accumulator.
    out_tiled = jax.block_until_ready(
        ece_loss(logits, labels, t=1.0, n_bins=15, block_rows=32))
    ref = _ece_reference(logits, labels, t=1.0, n_bins=15)
    assert out_tiled.shape == (1,)
    assert jnp.allclose(out_tiled, ref, atol=1e-5), (out_tiled, ref)

    # Single-tile path with bf16 passthrough (halved HBM traffic for logits).
    logits_bf16 = logits.astype(jnp.bfloat16)
    out_bf16 = jax.block_until_ready(ece_loss(logits_bf16, labels, t=1.0, n_bins=15))
    ref_bf16 = _ece_reference(logits_bf16.astype(jnp.float32), labels, t=1.0, n_bins=15)
    assert jnp.allclose(out_bf16, ref_bf16, atol=1e-5), (out_bf16, ref_bf16)

    print("KERNEL_OK")
</pallas_src>

<mosaic_0001>
module attributes {stable_mosaic.version = 11 : i64} {
  func.func @_ece_kernel(%arg0: i32, %arg1: memref<32x128xf32, #tpu.memory_space<vmem>>, %arg2: memref<32x1xi32, #tpu.memory_space<vmem>>, %arg3: memref<1x1xf32, #tpu.memory_space<vmem>>, %arg4: memref<1x15xf32, #tpu.memory_space<vmem>>, %arg5: memref<1x15xf32, #tpu.memory_space<vmem>>, %arg6: memref<1x15xf32, #tpu.memory_space<vmem>>) attributes {dimension_semantics = [#tpu.dimension_semantics<arbitrary>], iteration_bounds = array<i64: 4>, scalar_prefetch = 0 : i64, scratch_operands = 3 : i64, tpu.core_type = #tpu.core_type<tc>, window_params = [{transform_indices = @transform_0, window_bounds = array<i64: 32, 128>}, {transform_indices = @transform_1, window_bounds = array<i64: 32, 1>}, {pipeline_mode = #tpu.pipeline_mode<synchronous>, transform_indices = @transform_2, window_bounds = array<i64: 1, 1>}]} {
    %c0_i32 = arith.constant 0 : i32
    %0 = arith.cmpi eq, %arg0, %c0_i32 : i32
    %1 = arith.extui %0 : i1 to i32
    %c0_i32_0 = arith.constant 0 : i32
    %2 = arith.cmpi ne, %1, %c0_i32_0 : i32
    scf.if %2 {
      %cst_28 = arith.constant 0.000000e+00 : f32
      %75 = vector.broadcast %cst_28 : f32 to vector<1x15xf32>
      %c0_29 = arith.constant 0 : index
      %c0_30 = arith.constant 0 : index
      %76 = vector.load %arg4[%c0_29, %c0_30] : memref<1x15xf32, #tpu.memory_space<vmem>>, vector<1x15xf32>
      tpu.vector_store %arg4[%c0_29, %c0_30], %75 {strides = array<i32>} : memref<1x15xf32, #tpu.memory_space<vmem>>, vector<1x15xf32>,
      %cst_31 = arith.constant 0.000000e+00 : f32
      %77 = vector.broadcast %cst_31 : f32 to vector<1x15xf32>
      %c0_32 = arith.constant 0 : index
      %c0_33 = arith.constant 0 : index
      %78 = vector.load %arg5[%c0_32, %c0_33] : memref<1x15xf32, #tpu.memory_space<vmem>>, vector<1x15xf32>
      tpu.vector_store %arg5[%c0_32, %c0_33], %77 {strides = array<i32>} : memref<1x15xf32, #tpu.memory_space<vmem>>, vector<1x15xf32>,
      %cst_34 = arith.constant 0.000000e+00 : f32
      %79 = vector.broadcast %cst_34 : f32 to vector<1x15xf32>
      %c0_35 = arith.constant 0 : index
      %c0_36 = arith.constant 0 : index
      %80 = vector.load %arg6[%c0_35, %c0_36] : memref<1x15xf32, #tpu.memory_space<vmem>>, vector<1x15xf32>
      tpu.vector_store %arg6[%c0_35, %c0_36], %79 {strides = array<i32>} : memref<1x15xf32, #tpu.memory_space<vmem>>, vector<1x15xf32>,
    } else {
    }
    %c0 = arith.constant 0 : index
    %c0_1 = arith.constant 0 : index
    %3 = vector.load %arg1[%c0, %c0_1] : memref<32x128xf32, #tpu.memory_space<vmem>>, vector<32x128xf32>
    %4 = tpu.iota {dimensions = array<i32: 1>} : vector<32x128xi32>
    %c10_i32 = arith.constant 10 : i32
    %5 = vector.broadcast %c10_i32 : i32 to vector<32x128xi32>
    %6 = arith.cmpi slt, %4, %5 : vector<32x128xi32>
    %cst = arith.constant 0xFF800000 : f32
    %7 = vector.broadcast %cst : f32 to vector<32x128xf32>
    %8 = arith.select %6, %3, %7 : vector<32x128xi1>, vector<32x128xf32>
    %cst_2 = arith.constant dense<0xFF800000> : vector<32xf32>
    %9 = vector.multi_reduction <maximumf>, %8, %cst_2 [1] : vector<32x128xf32> to vector<32xf32>
    %10 = vector.shape_cast %9 : vector<32xf32> to vector<32x1xf32>
    %11 = vector.broadcast %10 : vector<32x1xf32> to vector<32x128xf32>
    %12 = arith.subf %8, %11 : vector<32x128xf32>
    %13 = math.exp %12 : vector<32x128xf32>
    %cst_3 = arith.constant dense<0.000000e+00> : vector<32xf32>
    %14 = vector.multi_reduction <add>, %13, %cst_3 [1] : vector<32x128xf32> to vector<32xf32>
    %15 = vector.shape_cast %14 : vector<32xf32> to vector<32x1xf32>
    %cst_4 = arith.constant 1.000000e+00 : f32
    %16 = vector.broadcast %cst_4 : f32 to vector<32x1xf32>
    %17 = arith.divf %16, %15 : vector<32x1xf32>
    %18 = vector.broadcast %10 : vector<32x1xf32> to vector<32x128xf32>
    %19 = arith.cmpf oeq, %8, %18 : vector<32x128xf32>
    %c128_i32 = arith.constant 128 : i32
    %20 = vector.broadcast %c128_i32 : i32 to vector<32x128xi32>
    %21 = arith.select %19, %4, %20 : vector<32x128xi1>, vector<32x128xi32>
    %cst_5 = arith.constant dense<2147483647> : vector<32xi32>
    %22 = vector.multi_reduction <minsi>, %21, %cst_5 [1] : vector<32x128xi32> to vector<32xi32>
    %23 = vector.shape_cast %22 : vector<32xi32> to vector<32x1xi32>
    %c0_6 = arith.constant 0 : index
    %c0_7 = arith.constant 0 : index
    %24 = vector.load %arg2[%c0_6, %c0_7] : memref<32x1xi32, #tpu.memory_space<vmem>>, vector<32x1xi32>
    %25 = arith.cmpi eq, %23, %24 : vector<32x1xi32>
    %26 = arith.extui %25 : vector<32x1xi1> to vector<32x1xi32>
    %27 = arith.sitofp %26 : vector<32x1xi32> to vector<32x1xf32>
    %28 = tpu.iota {dimensions = array<i32: 1>} : vector<1x15xi32>
    %29 = arith.sitofp %28 : vector<1x15xi32> to vector<1x15xf32>
    %cst_8 = arith.constant 0.0666666701 : f32
    %30 = vector.broadcast %cst_8 : f32 to vector<1x15xf32>
    %31 = arith.mulf %29, %30 : vector<1x15xf32>
    %cst_9 = arith.constant 1.000000e+00 : f32
    %32 = vector.broadcast %cst_9 : f32 to vector<1x15xf32>
    %33 = arith.addf %29, %32 : vector<1x15xf32>
    %cst_10 = arith.constant 0.0666666701 : f32
    %34 = vector.broadcast %cst_10 : f32 to vector<1x15xf32>
    %35 = arith.mulf %33, %34 : vector<1x15xf32>
    %36 = vector.broadcast %17 : vector<32x1xf32> to vector<32x15xf32>
    %37 = vector.broadcast %31 : vector<1x15xf32> to vector<32x15xf32>
    %38 = arith.cmpf ogt, %36, %37 : vector<32x15xf32>
    %39 = vector.broadcast %17 : vector<32x1xf32> to vector<32x15xf32>
    %40 = vector.broadcast %35 : vector<1x15xf32> to vector<32x15xf32>
    %41 = arith.cmpf ole, %39, %40 : vector<32x15xf32>
    %42 = arith.andi %38, %41 : vector<32x15xi1>
    %43 = arith.extui %42 : vector<32x15xi1> to vector<32x15xi32>
    %44 = arith.sitofp %43 : vector<32x15xi32> to vector<32x15xf32>
    %45 = tpu.iota {dimensions = array<i32: 0>} : vector<32x15xi32>
    %c32_i32 = arith.constant 32 : i32
    %46 = arith.muli %arg0, %c32_i32 : i32
    %47 = vector.broadcast %46 : i32 to vector<32x15xi32>
    %48 = arith.addi %45, %47 : vector<32x15xi32>
    %c100_i32 = arith.constant 100 : i32
    %49 = vector.broadcast %c100_i32 : i32 to vector<32x15xi32>
    %50 = arith.cmpi slt, %48, %49 : vector<32x15xi32>
    %cst_11 = arith.constant 0.000000e+00 : f32
    %51 = vector.broadcast %cst_11 : f32 to vector<32x15xf32>
    %52 = arith.select %50, %44, %51 : vector<32x15xi1>, vector<32x15xf32>
    %c0_12 = arith.constant 0 : index
    %c0_13 = arith.constant 0 : index
    %53 = vector.load %arg4[%c0_12, %c0_13] : memref<1x15xf32, #tpu.memory_space<vmem>>, vector<1x15xf32>
    %cst_14 = arith.constant dense<0.000000e+00> : vector<15xf32>
    %54 = vector.multi_reduction <add>, %52, %cst_14 [0] : vector<32x15xf32> to vector<15xf32>
    %55 = vector.shape_cast %54 : vector<15xf32> to vector<1x15xf32>
    %56 = arith.addf %53, %55 : vector<1x15xf32>
    %c0_15 = arith.constant 0 : index
    %c0_16 = arith.constant 0 : index
    %57 = vector.load %arg4[%c0_15, %c0_16] : memref<1x15xf32, #tpu.memory_space<vmem>>, vector<1x15xf32>
    tpu.vector_store %arg4[%c0_15, %c0_16], %56 {strides = array<i32>} : memref<1x15xf32, #tpu.memory_space<vmem>>, vector<1x15xf32>,
    %c0_17 = arith.constant 0 : index
    %c0_18 = arith.constant 0 : index
    %58 = vector.load %arg5[%c0_17, %c0_18] : memref<1x15xf32, #tpu.memory_space<vmem>>, vector<1x15xf32>
    %59 = vector.broadcast %17 : vector<32x1xf32> to vector<32x15xf32>
    %60 = arith.mulf %59, %52 : vector<32x15xf32>
    %cst_19 = arith.constant dense<0.000000e+00> : vector<15xf32>
    %61 = vector.multi_reduction <add>, %60, %cst_19 [0] : vector<32x15xf32> to vector<15xf32>
    %62 = vector.shape_cast %61 : vector<15xf32> to vector<1x15xf32>
    %63 = arith.addf %58, %62 : vector<1x15xf32>
    %c0_20 = arith.constant 0 : index
    %c0_21 = arith.constant 0 : index
    %64 = vector.load %arg5[%c0_20, %c0_21] : memref<1x15xf32, #tpu.memory_space<vmem>>, vector<1x15xf32>
    tpu.vector_store %arg5[%c0_20, %c0_21], %63 {strides = array<i32>} : memref<1x15xf32, #tpu.memory_space<vmem>>, vector<1x15xf32>,
    %c0_22 = arith.constant 0 : index
    %c0_23 = arith.constant 0 : index
    %65 = vector.load %arg6[%c0_22, %c0_23] : memref<1x15xf32, #tpu.memory_space<vmem>>, vector<1x15xf32>
    %66 = vector.broadcast %27 : vector<32x1xf32> to vector<32x15xf32>
    %67 = arith.mulf %66, %52 : vector<32x15xf32>
    %cst_24 = arith.constant dense<0.000000e+00> : vector<15xf32>
    %68 = vector.multi_reduction <add>, %67, %cst_24 [0] : vector<32x15xf32> to vector<15xf32>
    %69 = vector.shape_cast %68 : vector<15xf32> to vector<1x15xf32>
    %70 = arith.addf %65, %69 : vector<1x15xf32>
    %c0_25 = arith.constant 0 : index
    %c0_26 = arith.constant 0 : index
    %71 = vector.load %arg6[%c0_25, %c0_26] : memref<1x15xf32, #tpu.memory_space<vmem>>, vector<1x15xf32>
    tpu.vector_store %arg6[%c0_25, %c0_26], %70 {strides = array<i32>} : memref<1x15xf32, #tpu.memory_space<vmem>>, vector<1x15xf32>,
    %c3_i32 = arith.constant 3 : i32
    %72 = arith.cmpi eq, %arg0, %c3_i32 : i32
    %73 = arith.extui %72 : i1 to i32
    %c0_i32_27 = arith.constant 0 : i32
    %74 = arith.cmpi ne, %73, %c0_i32_27 : i32
    scf.if %74 {
      %c0_28 = arith.constant 0 : index
      %c0_29 = arith.constant 0 : index
      %75 = vector.load %arg4[%c0_28, %c0_29] : memref<1x15xf32, #tpu.memory_space<vmem>>, vector<1x15xf32>
      %cst_30 = arith.constant 0.000000e+00 : f32
      %76 = vector.broadcast %cst_30 : f32 to vector<1x15xf32>
      %77 = arith.cmpf ogt, %75, %76 : vector<1x15xf32>
      %cst_31 = arith.constant 1.000000e+00 : f32
      %78 = vector.broadcast %cst_31 : f32 to vector<1x15xf32>
      %79 = arith.select %77, %75, %78 : vector<1x15xi1>, vector<1x15xf32>
      %cst_32 = arith.constant 1.000000e+00 : f32
      %80 = vector.broadcast %cst_32 : f32 to vector<1x15xf32>
      %81 = arith.divf %80, %79 : vector<1x15xf32>
      %c0_33 = arith.constant 0 : index
      %c0_34 = arith.constant 0 : index
      %82 = vector.load %arg5[%c0_33, %c0_34] : memref<1x15xf32, #tpu.memory_space<vmem>>, vector<1x15xf32>
      %c0_35 = arith.constant 0 : index
      %c0_36 = arith.constant 0 : index
      %83 = vector.load %arg6[%c0_35, %c0_36] : memref<1x15xf32, #tpu.memory_space<vmem>>, vector<1x15xf32>
      %84 = arith.subf %82, %83 : vector<1x15xf32>
      %85 = arith.mulf %84, %81 : vector<1x15xf32>
      %86 = math.absf %85 : vector<1x15xf32>
      %cst_37 = arith.constant 0.00999999977 : f32
      %87 = vector.broadcast %cst_37 : f32 to vector<1x15xf32>
      %88 = arith.mulf %75, %87 : vector<1x15xf32>
      %89 = arith.mulf %86, %88 : vector<1x15xf32>
      %cst_38 = arith.constant 0.000000e+00 : f32
      %90 = vector.broadcast %cst_38 : f32 to vector<1x15xf32>
      %91 = arith.select %77, %89, %90 : vector<1x15xi1>, vector<1x15xf32>
      %92 = vector.shape_cast %91 : vector<1x15xf32> to vector<1x1x15xf32>
      %cst_39 = arith.constant dense<0.000000e+00> : vector<1xf32>
      %93 = vector.multi_reduction <add>, %92, %cst_39 [1, 2] : vector<1x1x15xf32> to vector<1xf32>
      %94 = vector.shape_cast %93 : vector<1xf32> to vector<1x1x1xf32>
      %95 = vector.extract %94[0, 0, 0] : f32 from vector<1x1x1xf32>
      %96 = vector.broadcast %95 : f32 to vector<1x1xf32>
      %c0_40 = arith.constant 0 : index
      %c0_41 = arith.constant 0 : index
      %97 = vector.load %arg3[%c0_40, %c0_41] : memref<1x1xf32, #tpu.memory_space<vmem>>, vector<1x1xf32>
      tpu.vector_store %arg3[%c0_40, %c0_41], %96 {strides = array<i32>} : memref<1x1xf32, #tpu.memory_space<vmem>>, vector<1x1xf32>,
    } else {
    }
    return
  }
  func.func @transform_0(%arg0: i32) -> (i32, i32) {
    %c0_i32 = arith.constant 0 : i32
    %c0_i32_0 = arith.constant 0 : i32
    return %arg0, %c0_i32 : i32, i32
  }
  func.func @transform_1(%arg0: i32) -> (i32, i32) {
    %c0_i32 = arith.constant 0 : i32
    %c0_i32_0 = arith.constant 0 : i32
    return %arg0, %c0_i32 : i32, i32
  }
  func.func @transform_2(%arg0: i32) -> (i32, i32) {
    %c0_i32 = arith.constant 0 : i32
    %c0_i32_0 = arith.constant 0 : i32
    %c0_i32_1 = arith.constant 0 : i32
    return %c0_i32, %c0_i32_0 : i32, i32
  }
}

</mosaic_0001>

<bundles_post_ra>
// kernel: tpu_custom_call.1
= control target key start
LH: loop header
LB: loop body
LE: loop exit
PB: predicated region body
PF: predicated region fallthrough
CT: control target
= control target key end

     0   :  { %7 = vsyncpa [#allocation6], 0  ;;  %s698_s9 = smov 0   ;;  %s817_s0 = inlined_call_operand.vmem [shape: f32[128,128], index: 0, kind: input, shape index: {}]   ;;  %s818_s1 = inlined_call_operand.vmem [shape: s32[128,1], index: 1, kind: input, shape index: {}]   ;;  %s819_s2 = inlined_call_operand.hbm [shape: f32[1,1], index: 2, kind: output, shape index: {}]  }
   0x1 LB: > { %s704_s10 = sadd.s32 4294967295, %s677_s9   ;;  %p568_p0 = scmp.ge.s32.totalorder %s677_s9, 1  ;;  %s677_s9 = sphi %s698_s9, %s13_s9  }
   0x2   : > { %p120_p1 = scmp.lt.s32.totalorder %s677_s9, 5 }
   0x4   : > { %p121_p2 = pnand %p568_p0, %p120_p1 }
   0x5   : > { %s569_s11 = sshll.u32 (!%p121_p2), %s704_s10, 2  ;;  %p573_p4 = scmp.ne.s32.totalorder (!%p121_p2), %s704_s10, 0 }
   0x6   : > { %124 = sbr.rel (%p121_p2) target bundleno = 752 (0x2f0), region = 28  ;;  %p143_p3 = scmp.lt.s32.totalorder (!%p121_p2), %s569_s11, 15 }
   0xb   : > { %s821_s11 = smov (!%p143_p3, %s569_s11), 15  ;;  %157 = sbr.rel (%p573_p4) target bundleno = 20 (0x14), region = 32 }
   0xc   : > { %s570_s12 = sshll.u32 %s821_s11, 3 }
   0xd   : > { %s146_s15 = scalar_lea.vmem %s817_s0, %s570_s12  ;;  %s715_s18 = scalar_lea.vmem %s818_s1, %s570_s12 }
  0x10   : > { %vm158_vm0 = vcmask 114688   ;;  %v679_v0 = vmov 0.0  }
  0x11   : > { %159 = vst.msk [vmem:[#allocation2] sm:$0x1] %vm158_vm0, %v679_v0 }
  0x12   : > { %160 = vst.msk [vmem:[#allocation3] sm:$0x1] %vm158_vm0, %v679_v0 }
  0x13   : > { %161 = vst.msk [vmem:[#allocation4] sm:$0x1] %vm158_vm0, %v679_v0 }
  0x14 PF: > { %v166_v1 = vlaneseq  ;;  %v164_v2 = vld [vmem:[%s146_s15 + $0x10] sm:$0xff]  ;;  %v162_v4 = vld [vmem:[%s146_s15] sm:$0xff]  ;;  %v165_v7 = vld [vmem:[%s146_s15 + $0x18] sm:$0xff]  ;;  %v680_v55 = vmov 0   ;;  %s582_s19 = sshll.u32 %s704_s10, 5  ;;  %p583_p5 = scmp.ne.s32.totalorder %s704_s10, 3 }
  0x15   : > { %v163_v8 = vld [vmem:[%s146_s15 + $0x8] sm:$0xff]  ;;  %614 = vset.pattern.permute.xlu2 %v680_v55  ;;  %608 = vset.pattern.permute.xlu1 %v680_v55 }
  0x16   : > { %v719_v3 = vand.u32 127, %v166_v1  ;;  %620 = vset.pattern.permute.xlu0 %v680_v55 }
  0x18   : > { %vm168_vm1 = vcmp.lt.s32.totalorder %v719_v3, 10 }
  0x19   : > { %v171_v5 = vsel %vm168_vm1, %v164_v2, -inf  ;;  %v169_v6 = vsel %vm168_vm1, %v162_v4, -inf  ;;  %v722_v9 = vsel %vm168_vm1, %v165_v7, -inf  ;;  %v170_v10 = vsel %vm168_vm1, %v163_v8, -inf  ;;  %v327_v7 = vld [vmem:[%s715_s18 + $0x10] sm:$0xff] }
  0x1a   : > { %177 = vmax.xlane.f32.xlu1 %v171_v5  ;;  %173 = vmax.xlane.f32.xlu0 %v169_v6 }
  0x22   : > { %179 = vmax.xlane.f32.xlu1 %v722_v9  ;;  %175 = vmax.xlane.f32.xlu0 %v170_v10 }
  0x8d   : > { %v178_v11 = vpop.xlane.xlu1 %177  ;;  %v174_v12 = vpop.xlane.xlu0 %173 }
  0x8e   : > { %vm263_vm2 = vcmp.eq.f32.partialorder %v171_v5, %v178_v11  ;;  %vm261_vm3 = vcmp.eq.f32.partialorder %v169_v6, %v174_v12  ;;  %v183_v37 = vsub.f32 %v171_v5, %v178_v11  ;;  %v181_v38 = vsub.f32 %v169_v6, %v174_v12  ;;  %v325_v6 = vld [vmem:[%s715_s18] sm:$0xff] }
  0x8f   : > { %v267_v13 = vsel %vm263_vm2, %v719_v3, 128  ;;  %v265_v14 = vsel %vm261_vm3, %v719_v3, 128 }
  0x90   : > { %v298_v15 = vshra.s32 %v267_v13, 16  ;;  %v270_v16 = vshra.s32 %v265_v14, 16  ;;  %v269_v27 = vand.u32 65535, %v265_v14  ;;  %v297_v28 = vand.u32 65535, %v267_v13 }
  0x91   : > { %v189_v41 = vmul.f32 1.442695, %v183_v37  ;;  %v185_v42 = vmul.f32 1.442695, %v181_v38 }
  0x92   : > { %v300_v17 = vcvt.s32.f32 %v298_v15  ;;  %v272_v18 = vcvt.s32.f32 %v270_v16  ;;  %v271_v32 = vcvt.s32.f32 %v269_v27  ;;  %v299_v33 = vcvt.s32.f32 %v297_v28  ;;  %v328_v15 = vld [vmem:[%s715_s18 + $0x18] sm:$0xff]  ;;  %v326_v16 = vld [vmem:[%s715_s18 + $0x8] sm:$0xff] }
  0x94   : > { %301 = vmin.xlane.f32.xlu0 %v300_v17  ;;  %273 = vmin.xlane.f32.xlu2 %v272_v18 }
  0x95   : > { %v180_v19 = vpop.xlane.xlu1 %179  ;;  %v176_v20 = vpop.xlane.xlu0 %175 }
  0x96   : > { %vm264_vm4 = vcmp.eq.f32.partialorder %v722_v9, %v180_v19  ;;  %vm262_vm5 = vcmp.eq.f32.partialorder %v170_v10, %v176_v20  ;;  %v182_v29 = vsub.f32 %v170_v10, %v176_v20  ;;  %v184_v50 = vsub.f32 %v722_v9, %v180_v19 }
  0x97   : > { %v268_v21 = vsel %vm264_vm4, %v719_v3, 128  ;;  %v266_v22 = vsel %vm262_vm5, %v719_v3, 128  ;;  %v681_v19 = vmov 0.0  }
  0x98   : > { %v312_v23 = vshra.s32 %v268_v21, 16  ;;  %v284_v24 = vshra.s32 %v266_v22, 16  ;;  %v187_v34 = vmul.f32 1.442695, %v182_v29  ;;  %v311_v39 = vand.u32 65535, %v268_v21 }
  0x99   : > { %v283_v40 = vand.u32 65535, %v266_v22  ;;  %v191_v51 = vmul.f32 1.442695, %v184_v50 }
  0x9a   : > { %v314_v25 = vcvt.s32.f32 %v312_v23  ;;  %v286_v26 = vcvt.s32.f32 %v284_v24  ;;  %621 = vpow2.f32 %v187_v34  ;;  %v313_v45 = vcvt.s32.f32 %v311_v39 }
  0x9b   : > { %v285_v46 = vcvt.s32.f32 %v283_v40  ;;  %623 = vpow2.f32 %v189_v41 }
  0x9c   : > { %315 = vmin.xlane.f32.xlu1 %v314_v25  ;;  %287 = vmin.xlane.f32.xlu2 %v286_v26  ;;  %625 = vpow2.f32 %v185_v42 }
  0x9d   : > { %627 = vpow2.f32 %v191_v51 }
  0xa0   : > { %v622_v49 = vpop.eup %621 }
  0xa1   : > { %v624_v52 = vpop.eup %623 }
  0xa2   : > { %v626_v53 = vpop.eup %625 }
  0xa3   : > { %v628_v54 = vpop.eup %627 }
 0x107   : > { %v274_v30 = vpop.xlane.xlu2 %273  ;;  %v302_v31 = vpop.xlane.xlu0 %301 }
 0x108   : > { %vm275_vm6 = vcmp.eq.f32.partialorder %v272_v18, %v274_v30  ;;  %vm303_vm7 = vcmp.eq.f32.partialorder %v300_v17, %v302_v31  ;;  %v280_v58 = vcvt.f32.s32 %v274_v30  ;;  %v308_v59 = vcvt.f32.s32 %v302_v31 }
 0x109   : > { %v276_v35 = vsel %vm275_vm6, %v271_v32, inf  ;;  %v304_v36 = vsel %vm303_vm7, %v299_v33, inf  ;;  %v341_v31 = vcvt.s32.f32 %v719_v3 }
 0x10a   : > { %277 = vmin.xlane.f32.xlu2 %v276_v35  ;;  %305 = vmin.xlane.f32.xlu1 %v304_v36  ;;  %v281_v62 = vshll.u32 %v280_v58, 16  ;;  %v309_v63 = vshll.u32 %v308_v59, 16  ;;  %v745_v35 = vstv %s582_s19 }
 0x10b   : > { %v343_v37 = vadd.f32 1.0, %v341_v31 }
 0x10f   : > { %v316_v43 = vpop.xlane.xlu1 %315  ;;  %v288_v44 = vpop.xlane.xlu2 %287 }
 0x110   : > { %vm317_vm8 = vcmp.eq.f32.partialorder %v314_v25, %v316_v43  ;;  %vm289_vm9 = vcmp.eq.f32.partialorder %v286_v26, %v288_v44  ;;  %v322_v0 = vcvt.f32.s32 %v316_v43  ;;  %v294_v2 = vcvt.f32.s32 %v288_v44 }
 0x111   : > { %v318_v47 = vsel %vm317_vm8, %v313_v45, inf  ;;  %v290_v48 = vsel %vm289_vm9, %v285_v46, inf  ;;  %v366_v26 = vshrl.u32 %v166_v1, 7  ;;  %v750_v44 = vmul.f32 0.06666667, %v341_v31 }
 0x112   : > { %319 = vmin.xlane.f32.xlu2 %v318_v47  ;;  %291 = vmin.xlane.f32.xlu0 %v290_v48  ;;  %v323_v10 = vshll.u32 %v322_v0, 16  ;;  %v295_v11 = vshll.u32 %v294_v2, 16  ;;  %v757_v48 = vmul.f32 0.06666667, %v343_v37 }
 0x113   : > { %195 = vadd.xlane.f32.xlu1 %v622_v49  ;;  %v367_v33 = vadd.s32 8, %v366_v26  ;;  %v368_v34 = vadd.s32 16, %v366_v26  ;;  %v372_v51 = vadd.s32 %v745_v35, %v366_v26  ;;  %v369_v0 = vadd.s32 24, %v366_v26 }
 0x115   : > { %v373_v41 = vadd.s32 %v745_v35, %v367_v33  ;;  %v753_v45 = vadd.s32 %v745_v35, %v368_v34 }
 0x117   : > { %vm377_vm2 = vcmp.lt.s32.totalorder %v373_v41, 100  ;;  %vm378_vm4 = vcmp.lt.s32.totalorder %v753_v45, 100 }
 0x11a   : > { %197 = vadd.xlane.f32.xlu2 %v624_v52  ;;  %193 = vadd.xlane.f32.xlu0 %v626_v53 }
 0x122   : > { %199 = vadd.xlane.f32.xlu0 %v628_v54 }
 0x17d   : > { %v278_v56 = vpop.xlane.xlu2 %277  ;;  %v306_v57 = vpop.xlane.xlu1 %305 }
 0x17e   : > { %v279_v60 = vcvt.f32.s32 %v278_v56  ;;  %v307_v61 = vcvt.f32.s32 %v306_v57 }
 0x180   : > { %v282_v4 = vadd.s32 %v281_v62, %v279_v60  ;;  %v310_v5 = vadd.s32 %v309_v63, %v307_v61 }
 0x182   : > { %vm329_vm10 = vcmp.eq.s32.totalorder %v282_v4, %v325_v6  ;;  %vm331_vm11 = vcmp.eq.s32.totalorder %v310_v5, %v327_v7 }
 0x183   : > { %v576_v20 = vsel %vm331_vm11, 1.0, %v681_v19  ;;  %v574_v22 = vsel %vm329_vm10, 1.0, %v681_v19  ;;  %vm376_vm10 = vcmp.lt.s32.totalorder %v372_v51, 100  ;;  %v384_v51 = vld [vmem:[#allocation2] sm:$0x1] }
 0x185   : > { %v320_v8 = vpop.xlane.xlu2 %319  ;;  %v292_v9 = vpop.xlane.xlu0 %291 }
 0x186   : > { %v321_v12 = vcvt.f32.s32 %v320_v8  ;;  %v196_v13 = vpop.xlane.xlu1 %195  ;;  %v293_v14 = vcvt.f32.s32 %v292_v9 }
 0x187   : > { %629 = vrcp.f32 %v196_v13  ;;  %v227_v1 = vand.u32 2147483648, %v196_v13  ;;  %v225_v38 = vand.u32 2147483647, %v196_v13  ;;  %vm221_vm15 = vweird.f32 %v196_v13 }
 0x188   : > { %v324_v17 = vadd.s32 %v323_v10, %v321_v12  ;;  %v296_v18 = vadd.s32 %v295_v11, %v293_v14 }
 0x189   : > { %v228_v46 = vor.u32 1.1754944e-38, %v227_v1  ;;  %vm226_vm1 = vcmp.eq.f32.partialorder %v225_v38, 8.507059e+37 }
 0x18a   : > { %vm332_vm12 = vcmp.eq.s32.totalorder %v324_v17, %v328_v15  ;;  %vm330_vm13 = vcmp.eq.s32.totalorder %v296_v18, %v326_v16  ;;  %v375_v16 = vadd.s32 %v745_v35, %v369_v0 }
 0x18b   : > { %v577_v21 = vsel %vm332_vm12, 1.0, %v681_v19  ;;  %v575_v23 = vsel %vm330_vm13, 1.0, %v681_v19 }
 0x18c   : > { %v615_v24 = vpack.i.bf16 %v577_v21, %v576_v20  ;;  %v609_v25 = vpack.i.bf16 %v575_v23, %v574_v22 }
 0x18d   : > { %v630_v27 = vpop.eup %629  ;;  %v198_v28 = vpop.xlane.xlu2 %197 }
 0x18e   : > { %v740_v29 = vpop.xlane.xlu0 %193  ;;  %v217_v30 = vmul.f32 %v630_v27, %v196_v13  ;;  %631 = vrcp.f32 %v198_v28  ;;  %616 = vperm.xlu2 %614, %v615_v24   ;;  %610 = vperm.xlu1 %608, %v609_v25   ;;  %vm222_vm14 = vweird.f32 %v630_v27  ;;  %v242_v52 = vand.u32 2147483648, %v198_v28 }
 0x18f   : > { %633 = vrcp.f32 %v740_v29  ;;  %vm223_vm0 = vmor %vm221_vm15, %vm222_vm14  ;;  %v240_v56 = vand.u32 2147483647, %v198_v28  ;;  %v210_v58 = vand.u32 2147483647, %v740_v29  ;;  %v212_v59 = vand.u32 2147483648, %v740_v29 }
 0x190   : > { %v218_v32 = vsub.f32 1.0, %v217_v30  ;;  %vm236_vm7 = vweird.f32 %v198_v28  ;;  %v243_v62 = vor.u32 1.1754944e-38, %v242_v52  ;;  %vm206_vm13 = vweird.f32 %v740_v29 }
 0x191   : > { %vm241_vm12 = vcmp.eq.f32.partialorder %v240_v56, 8.507059e+37  ;;  %vm211_vm15 = vcmp.eq.f32.partialorder %v210_v58, 8.507059e+37  ;;  %v213_v6 = vor.u32 1.1754944e-38, %v212_v59 }
 0x192   : > { %v219_v36 = vmul.f32 %v630_v27, %v218_v32 }
 0x194   : > { %v632_v39 = vpop.eup %631  ;;  %v220_v40 = vadd.f32 %v630_v27, %v219_v36 }
 0x195   : > { %v634_v42 = vpop.eup %633  ;;  %v232_v3 = vmul.f32 %v632_v39, %v198_v28  ;;  %vm237_vm3 = vweird.f32 %v632_v39 }
 0x196   : > { %v748_v43 = vpop.xlane.xlu0 %199  ;;  %v202_v47 = vmul.f32 %v634_v42, %v740_v29  ;;  %v224_v50 = vsel %vm223_vm0, %v630_v27, %v220_v40  ;;  %vm207_vm8 = vweird.f32 %v634_v42  ;;  %vm238_vm11 = vmor %vm236_vm7, %vm237_vm3  ;;  %vm385_vm7 = vcmask 121856  }
 0x197   : > { %635 = vrcp.f32 %v748_v43  ;;  %v233_v49 = vsub.f32 1.0, %v232_v3  ;;  %v229_v54 = vsel %vm226_vm1, %v228_v46, %v224_v50  ;;  %vm208_vm14 = vmor %vm206_vm13, %vm207_vm8  ;;  %v255_v11 = vand.u32 2147483647, %v748_v43 }
 0x198   : > { %v203_v53 = vsub.f32 1.0, %v202_v47  ;;  %vm346_vm5 = vcmp.gt.f32.partialorder %v229_v54, %v750_v44  ;;  %vm350_vm6 = vcmp.le.f32.partialorder %v229_v54, %v757_v48  ;;  %v257_v12 = vand.u32 2147483648, %v748_v43 }
 0x199   : > { %v234_v55 = vmul.f32 %v632_v39, %v233_v49  ;;  %vm354_vm9 = vmand %vm346_vm5, %vm350_vm6  ;;  %vm379_vm13 = vcmp.lt.s32.totalorder %v375_v16, 100 }
 0x19a   : > { %v204_v57 = vmul.f32 %v634_v42, %v203_v53  ;;  %v579_v2 = vsel %vm354_vm9, 1.0, %v681_v19  ;;  %vm251_vm9 = vweird.f32 %v748_v43  ;;  %v258_v21 = vor.u32 1.1754944e-38, %v257_v12 }
 0x19b   : > { %v235_v60 = vadd.f32 %v632_v39, %v234_v55  ;;  %v769_v8 = vsel %vm377_vm2, %v579_v2, 0.0 }
 0x19c   : > { %v205_v63 = vadd.f32 %v634_v42, %v204_v57  ;;  %v404_v17 = vmul.f32 %v769_v8, %v229_v54  ;;  %v387_v25 = vsel %vm385_vm7, %v769_v8, 0.0  ;;  %v402_v54 = vld [vmem:[#allocation3] sm:$0x1] }
 0x19d   : > { %v636_v61 = vpop.eup %635  ;;  %v239_v5 = vsel %vm238_vm11, %v632_v39, %v235_v60 }
 0x19e   : > { %v247_v4 = vmul.f32 %v636_v61, %v748_v43  ;;  %v244_v7 = vsel %vm241_vm12, %v243_v62, %v239_v5  ;;  %v209_v10 = vsel %vm208_vm14, %v634_v42, %v205_v63  ;;  %vm252_vm3 = vweird.f32 %v636_v61 }
 0x19f   : > { %vm347_vm0 = vcmp.gt.f32.partialorder %v244_v7, %v750_v44  ;;  %vm351_vm1 = vcmp.le.f32.partialorder %v244_v7, %v757_v48  ;;  %v214_v13 = vsel %vm211_vm15, %v213_v6, %v209_v10  ;;  %vm253_vm11 = vmor %vm251_vm9, %vm252_vm3  ;;  %vm256_vm12 = vcmp.eq.f32.partialorder %v255_v11, 8.507059e+37 }
 0x1a0   : > { %v248_v9 = vsub.f32 1.0, %v247_v4  ;;  %vm355_vm5 = vmand %vm347_vm0, %vm351_vm1  ;;  %vm345_vm6 = vcmp.gt.f32.partialorder %v214_v13, %v750_v44  ;;  %vm349_vm2 = vcmp.le.f32.partialorder %v214_v13, %v757_v48  ;;  %v408_v29 = vsel %vm385_vm7, %v404_v17, 0.0 }
 0x1a1   : > { %v580_v15 = vsel %vm355_vm5, 1.0, %v681_v19  ;;  %vm353_vm8 = vmand %vm345_vm6, %vm349_vm2 }
 0x1a2   : > { %v249_v14 = vmul.f32 %v636_v61, %v248_v9  ;;  %v578_v20 = vsel %vm353_vm8, 1.0, %v681_v19  ;;  %v382_v22 = vsel %vm378_vm4, %v580_v15, 0.0 }
 0x1a3   : > { %v380_v23 = vsel %vm376_vm10, %v578_v20, 0.0  ;;  %v405_v31 = vmul.f32 %v382_v22, %v244_v7  ;;  %v389_v34 = vsel %vm385_vm7, %v382_v22, 0.0  ;;  %vm400_vm10 = vcmask 114688   ;;  %v422_v20 = vld [vmem:[#allocation4] sm:$0x1] }
 0x1a4   : > { %v250_v18 = vadd.f32 %v636_v61, %v249_v14  ;;  %v386_v26 = vsel %vm385_vm7, %v380_v23, 0.0  ;;  %v403_v27 = vmul.f32 %v380_v23, %v214_v13 }
 0x1a5   : > { %v388_v30 = vadd.f32 %v387_v25, %v386_v26  ;;  %v410_v37 = vsel %vm385_vm7, %v405_v31, 0.0 }
 0x1a6   : > { %v254_v24 = vsel %vm253_vm11, %v636_v61, %v250_v18  ;;  %v407_v32 = vsel %vm385_vm7, %v403_v27, 0.0 }
 0x1a7   : > { %v259_v28 = vsel %vm256_vm12, %v258_v21, %v254_v24  ;;  %v409_v33 = vadd.f32 %v408_v29, %v407_v32  ;;  %v390_v1 = vadd.f32 %v389_v34, %v388_v30 }
 0x1a8   : > { %vm348_vm14 = vcmp.gt.f32.partialorder %v259_v28, %v750_v44  ;;  %vm352_vm15 = vcmp.le.f32.partialorder %v259_v28, %v757_v48 }
 0x1a9   : > { %vm356_vm4 = vmand %vm348_vm14, %vm352_vm15  ;;  %v411_v41 = vadd.f32 %v410_v37, %v409_v33 }
 0x1aa   : > { %v581_v35 = vsel %vm356_vm4, 1.0, %v681_v19 }
 0x1ab   : > { %v383_v36 = vsel %vm379_vm13, %v581_v35, 0.0 }
 0x1ac   : > { %v391_v38 = vsel %vm385_vm7, %v383_v36, 0.0  ;;  %v406_v39 = vmul.f32 %v383_v36, %v259_v28 }
 0x1ad   : > { %v392_v40 = vadd.f32 %v391_v38, %v390_v1 }
 0x1ae   : > { %v412_v42 = vsel %vm385_vm7, %v406_v39, 0.0 }
 0x1af   : > { %v393_v3 = vrot.slane %v392_v40, 4  ;;  %v413_v43 = vadd.f32 %v412_v42, %v411_v41 }
 0x1b1   : > { %v394_v44 = vadd.f32 %v393_v3, %v392_v40  ;;  %v414_v45 = vrot.slane %v413_v43, 4 }
 0x1b3   : > { %v395_v46 = vrot.slane %v394_v44, 2  ;;  %v415_v47 = vadd.f32 %v414_v45, %v413_v43 }
 0x1b5   : > { %v396_v48 = vadd.f32 %v395_v46, %v394_v44  ;;  %v416_v49 = vrot.slane %v415_v47, 2 }
 0x1b7   : > { %v397_v19 = vrot.slane %v396_v48, 1  ;;  %v417_v50 = vadd.f32 %v416_v49, %v415_v47 }
 0x1b9   : > { %v398_v52 = vadd.f32 %v397_v19, %v396_v48  ;;  %v418_v53 = vrot.slane %v417_v50, 1 }
 0x1bb   : > { %v399_v55 = vadd.f32 %v398_v52, %v384_v51  ;;  %v419_v56 = vadd.f32 %v418_v53, %v417_v50 }
 0x1bd   : > { %401 = vst.msk [vmem:[#allocation2] sm:$0x1] %vm400_vm10, %v399_v55  ;;  %v420_v57 = vadd.f32 %v419_v56, %v402_v54 }
 0x1bf   : > { %421 = vst.msk [vmem:[#allocation3] sm:$0x1] %vm400_vm10, %v420_v57 }
 0x1e8   : > { %v617_v58 = vpop.permute.xlu2 %616 }
 0x1e9   : > { %v618_v59 = vunpack.i.l.bf16 %v617_v58  ;;  %v619_v61 = vunpack.i.h.bf16 %v617_v58 }
 0x1eb   : > { %v445_v0 = vmul.f32 %v618_v59, %v382_v22  ;;  %v446_v5 = vmul.f32 %v619_v61, %v383_v36 }
 0x1ed   : > { %v450_v10 = vsel %vm385_vm7, %v445_v0, 0.0  ;;  %v452_v12 = vsel %vm385_vm7, %v446_v5, 0.0 }
 0x200   : > { %v611_v60 = vpop.permute.xlu1 %610 }
 0x201   : > { %v613_v62 = vunpack.i.h.bf16 %v611_v60  ;;  %v612_v63 = vunpack.i.l.bf16 %v611_v60 }
 0x203   : > { %v444_v2 = vmul.f32 %v613_v62, %v769_v8  ;;  %v443_v4 = vmul.f32 %v612_v63, %v380_v23 }
 0x205   : > { %v448_v6 = vsel %vm385_vm7, %v444_v2, 0.0  ;;  %v447_v7 = vsel %vm385_vm7, %v443_v4, 0.0 }
 0x206   : > { %v449_v9 = vadd.f32 %v448_v6, %v447_v7 }
 0x208   : > { %v451_v11 = vadd.f32 %v450_v10, %v449_v9 }
 0x20a   : > { %v453_v13 = vadd.f32 %v452_v12, %v451_v11 }
 0x20c   : > { %v454_v14 = vrot.slane %v453_v13, 4 }
 0x20e   : > { %v455_v15 = vadd.f32 %v454_v14, %v453_v13 }
 0x210   : > { %v456_v16 = vrot.slane %v455_v15, 2 }
 0x212   : > { %v457_v17 = vadd.f32 %v456_v16, %v455_v15 }
 0x214   : > { %v458_v18 = vrot.slane %v457_v17, 1 }
 0x216   : > { %v459_v8 = vadd.f32 %v458_v18, %v457_v17  ;;  %465 = sbr.rel (%p583_p5) target bundleno = 747 (0x2eb), region = 36 }
 0x218   : > { %v460_v21 = vadd.f32 %v459_v8, %v422_v20 }
 0x21a   : > { %461 = vst.msk [vmem:[#allocation4] sm:$0x1] %vm400_vm10, %v460_v21 }
 0x21b   : > { %v466_v22 = vld [vmem:[#allocation2] sm:$0x1]  ;;  %v484_v29 = vld [vmem:[#allocation3] sm:$0x1]  ;;  %vm503_vm2 = vcmask 0  }
 0x21c   : > { %vm467_vm0 = vcmp.gt.f32.partialorder %v466_v22, 0.0  ;;  %v489_v37 = vmul.f32 0.01, %v466_v22 }
 0x21d   : > { %v468_v23 = vsel %vm467_vm0, %v466_v22, 1.0 }
 0x21e   : > { %637 = vrcp.f32 %v468_v23  ;;  %v480_v26 = vand.u32 2147483648, %v468_v23  ;;  %vm474_vm1 = vweird.f32 %v468_v23  ;;  %v478_v28 = vand.u32 2147483647, %v468_v23 }
 0x220   : > { %v481_v32 = vor.u32 1.1754944e-38, %v480_v26  ;;  %vm479_vm6 = vcmp.eq.f32.partialorder %v478_v28, 8.507059e+37 }
 0x221   : > { %v485_v30 = vld [vmem:[#allocation4] sm:$0x1] }
 0x222   : > { %v486_v34 = vsub.f32 %v484_v29, %v485_v30 }
 0x224   : > { %v638_v24 = vpop.eup %637 }
 0x225   : > { %v470_v25 = vmul.f32 %v638_v24, %v468_v23  ;;  %vm475_vm3 = vweird.f32 %v638_v24 }
 0x226   : > { %vm476_vm5 = vmor %vm474_vm1, %vm475_vm3 }
 0x227   : > { %v471_v27 = vsub.f32 1.0, %v470_v25 }
 0x229   : > { %v472_v31 = vmul.f32 %v638_v24, %v471_v27 }
 0x22b   : > { %v473_v33 = vadd.f32 %v638_v24, %v472_v31 }
 0x22d   : > { %v477_v35 = vsel %vm476_vm5, %v638_v24, %v473_v33 }
 0x22e   : > { %v482_v36 = vsel %vm479_vm6, %v481_v32, %v477_v35 }
 0x22f   : > { %v487_v1 = vmul.f32 %v486_v34, %v482_v36 }
 0x231   : > { %v488_v38 = vand.u32 2147483647, %v487_v1 }
 0x233   : > { %v490_v39 = vmul.f32 %v489_v37, %v488_v38 }
 0x235   : > { %v491_v40 = vsel %vm467_vm0, %v490_v39, 0.0 }
 0x236   : > { %v492_v41 = vsel %vm400_vm10, %v491_v40, 0.0 }
 0x237   : > { %493 = vadd.xlane.f32.xlu0 %v492_v41 }
 0x2aa   : > { %v494_v42 = vpop.xlane.xlu0 %493 }
 0x2ab   : > { %v495_v3 = vrot.slane %v494_v42, 4 }
 0x2ad   : > { %v496_v43 = vadd.f32 %v495_v3, %v494_v42 }
 0x2af   : > { %v497_v44 = vrot.slane %v496_v43, 2 }
 0x2b1   : > { %v498_v45 = vadd.f32 %v497_v44, %v496_v43 }
 0x2b3   : > { %v499_v46 = vrot.slane %v498_v45, 1 }
 0x2b5   : > { %v500_v47 = vadd.f32 %v499_v46, %v498_v45 }
 0x2b7   : > { %588 = vpush %v500_v47 }
 0x2e8   : > { %s589_s20 = spop %588 }
 0x2e9   : > { %v502_v48 = vstv %s589_s20 }
 0x2ea   : > { %504 = vst.msk [vmem:[#allocation5] sm:$0x1] %vm503_vm2, %v502_v48 }
 0x2eb PF: > { %p594_p6 = scmp.eq.s32.totalorder %s704_s10, 3  ;;  %s682_s21 = smov [#allocation5]  }
 0x2ec   : > { %s511_s22 = sshll.u32 %s682_s21, 4  ;;  %s513_s25 = sshll.u32 %s819_s2, 4  ;;  %s512_s22 = int_to_ptr.vmem [resolvable:$true] %s511_s22  ;;  %s514_s25 = int_to_ptr.hbm [resolvable:$true] %s513_s25 }
 0x2ed   : > { %591 = dma.vmem_to_hbm [thread:$0]  (%p594_p6), %s512_s22, 16, %s514_s25, [#allocation6]  }
 0x2ee   : > { %672 = dma.done.wait (%p594_p6), [#allocation6], 16  }
 0x2ef   : > { %674 = vsyncadd (%p594_p6), [#allocation6], 4294967280 }
 0x2f0 PF: > { %s13_s9 = sadd.s32 1, %s677_s9  }
 0x2f1   : > { %p10_p7 = scmp.ge.s32.totalorder %s13_s9, 6  }
 0x2f3   :  { %12 = sbr.rel (!%p10_p7) target bundleno = 1 (0x1), region = 66 }
 0x2f8   :  { %527 = vsyncpa [#allocation6], 1 }
 0x2f9   :  { %529 = vsyncpa [#allocation6 + $0x1], 1 }

</bundles_post_ra>
